<compile_context>
chip_gen: v6e
topology: v6e:2x2x1
jax: 0.10.0
libtpu: 0.0.40
codegen_flags: <defaults>
</compile_context>

<pallas_src>
import functools

import jax
import jax.numpy as jnp
import numpy as np
from jax import lax
from jax.experimental import pallas as pl
from jax.experimental.pallas import tpu as pltpu


def _mrconv2d_kernel(idx_ref, x_ref, wx_ref, wr_ref, b_ref, o_ref, rel_ref, *,
                     B, N, C, K, TN, center_is_self, fuse_matmul):
    # idx_ref : SMEM int32, flat [sel, b, k, n] table (sel=0 neighbors, sel=1 centers;
    #           the centers half is absent when center_is_self).
    # x_ref   : (N, C) f32 VMEM — full node-feature table of the current batch.
    # wx_ref  : (C, O_pad) f32 — conv-weight columns multiplying x (even input channels).
    # wr_ref  : (C, O_pad) f32 — conv-weight columns multiplying rel (odd input channels).
    # b_ref   : (1, O_pad) f32
    # o_ref   : (TN, O_pad) f32
    # rel_ref : (TN, C) f32 VMEM scratch for the gathered max-relative features.
    b = pl.program_id(0)
    row0 = pl.multiple_of(pl.program_id(1) * TN, TN)

    base_j = b * (K * N) + row0                 # flat offset of (sel=0, b, k=0, row0)

    def load_row(flat_off):
        j = idx_ref[flat_off]                   # scalar read from SMEM
        j = jnp.clip(j, 0, N - 1)               # jnp.take-style clamping; no OOB VMEM reads
        return x_ref[pl.ds(j, 1), :]            # (1, C) dynamic-sublane row load

    def gather_row(t, carry):
        if center_is_self:
            # max_k x[idx_j[k]]; x_i == x[row] is constant over k -> subtracted later,
            # vectorized over the whole tile.
            acc = load_row(base_j + t)
            for k in range(1, K):               # K is small & static -> unrolled
                acc = jnp.maximum(acc, load_row(base_j + k * N + t))
        else:
            base_i = B * (K * N) + base_j       # centers half of the SMEM table
            acc = load_row(base_j + t) - load_row(base_i + t)
            for k in range(1, K):
                acc = jnp.maximum(acc, load_row(base_j + k * N + t)
                                  - load_row(base_i + k * N + t))
        rel_ref[pl.ds(t, 1), :] = acc
        return carry

    lax.fori_loop(0, TN, gather_row, 0)

    x_tile = x_ref[pl.ds(row0, TN), :]          # (TN, C) rows owned by this tile
    rel = rel_ref[...]
    if center_is_self:
        rel = rel - x_tile

    if fuse_matmul:
        # Single MXU push: [x | rel] @ [Wx ; Wr]   (C lane-aligned -> concat is copy-free).
        feat = jnp.concatenate([x_tile, rel], axis=-1)                     # (TN, 2C)
        w2 = jnp.concatenate([wx_ref[...], wr_ref[...]], axis=0)           # (2C, O_pad)
        out = jnp.dot(feat, w2, preferred_element_type=jnp.float32)
    else:
        out = (jnp.dot(x_tile, wx_ref[...], preferred_element_type=jnp.float32)
               + jnp.dot(rel, wr_ref[...], preferred_element_type=jnp.float32))
    out = out + b_ref[...]
    o_ref[...] = jnp.maximum(out, 0.0).astype(o_ref.dtype)                 # ReLU


def _vmem_limit_bytes():
    """Generation-aware scoped-VMEM request (None -> keep the compiler default)."""
    try:
        kind = jax.devices()[0].device_kind.lower()
    except Exception:
        return None
    if "v7" in kind or "tpu7" in kind or "7x" in kind:
        return 56 * 2**20            # v7x: 64 MiB physical per TensorCore
    if "v6" in kind or "v5" in kind:
        return 100 * 2**20           # v5e / v5p / v6e: 128 MiB physical
    return None


def _pick_tn(N, C, O_pad, budget_bytes):
    """Largest row tile (multiple of 8 dividing N) whose VMEM working set fits the budget."""
    fixed = 4 * (N * C               # per-batch x table (single-buffered)
                 + 2 * C * O_pad     # wx + wr (single-buffered)
                 + O_pad)            # bias
    cands = [t for t in (2048, 1024, 512, 256, 128, 64, 32, 16, 8)
             if t <= N and N % t == 0]
    if not cands:
        return N                     # N not 8-divisible: single full-row tile (block == full dim)
    for tn in cands:
        per_tile = 4 * (2 * tn * O_pad   # double-buffered output block
                        + tn * C         # rel scratch
                        + 3 * tn * C)    # x_tile / feat / matmul temporaries (headroom)
        if fixed + per_tile <= budget_bytes:
            return tn
    return cands[-1]                 # nothing fits: smallest tile; rely on vmem_limit headroom


def mrconv2d(x_nchw, edge_index, weight, bias):
    """MRConv2d forward.

    x_nchw     : (B, C, N, 1) float
    edge_index : (2, B, N, K) int   ([0] = neighbor index, [1] = center index)
    weight     : (O, 2C) float      (1x1 conv weight over interleaved [x, rel] channels)
    bias       : (O,) float
    returns    : (B, O, N, 1) float32
    """
    # TODO(synk): the optional `y` argument of MRConv2d.forward (neighbors gathered from a
    # second feature map) is not implemented; this covers the default y=None path.
    B, C, N, _ = x_nchw.shape
    K = edge_index.shape[-1]
    O = weight.shape[0]
    O_pad = ((O + 127) // 128) * 128         # lane-dense output -> unmasked vst stores

    x = jnp.transpose(x_nchw[..., 0], (0, 2, 1)).astype(jnp.float32)     # (B, N, C)

    # De-interleave the conv weight: even input channels multiply x, odd multiply rel.
    wx = jnp.transpose(weight[:, 0::2]).astype(jnp.float32)              # (C, O)
    wr = jnp.transpose(weight[:, 1::2]).astype(jnp.float32)              # (C, O)
    b2 = bias.astype(jnp.float32).reshape(1, O)
    if O_pad != O:                                                       # zero padding: exact math
        wx = jnp.pad(wx, ((0, 0), (0, O_pad - O)))
        wr = jnp.pad(wr, ((0, 0), (0, O_pad - O)))
        b2 = jnp.pad(b2, ((0, 0), (0, O_pad - O)))

    nbr = edge_index[0].astype(jnp.int32)                                # (B, N, K)
    ctr = edge_index[1].astype(jnp.int32)

    # ViG's dense_knn_matrix emits edge_index[1][b, n, k] == n; then x_i is the node itself
    # and the center gather can be skipped (exact math, see kernel).
    try:
        center_is_self = bool(jnp.all(
            ctr == jnp.arange(N, dtype=jnp.int32)[None, :, None]))
    except Exception:            # traced edge_index -> take the general path
        center_is_self = False

    # Flat SMEM index table, layout [sel, b, k, n] (1-D SMEM pads far less than >=2-D).
    nbr_flat = jnp.transpose(nbr, (0, 2, 1)).reshape(-1)                 # (B*K*N,)
    if center_is_self:
        idx_flat = nbr_flat
    else:
        ctr_flat = jnp.transpose(ctr, (0, 2, 1)).reshape(-1)
        idx_flat = jnp.concatenate([nbr_flat, ctr_flat], axis=0)         # (2*B*K*N,)

    # Generation-aware VMEM budget and tile size.
    vmem_limit = _vmem_limit_bytes()
    budget = int(0.6 * (vmem_limit if vmem_limit is not None else 16 * 2**20))
    TN = _pick_tn(N, C, O_pad, budget)
    # Keep >= ~4 grid steps when B is small: both v7x TensorCores get work and the pipeline
    # has something to overlap with the output DMAs.
    while (B * (N // TN) < 4 and TN % 2 == 0 and (TN // 2) >= 8
           and (TN // 2) % 8 == 0 and N % (TN // 2) == 0):
        TN //= 2
    grid = (B, N // TN)

    fuse_matmul = (C % 128 == 0)     # fuse only when the lane concat is alignment-free

    kernel = functools.partial(
        _mrconv2d_kernel, B=B, N=N, C=C, K=K, TN=TN,
        center_is_self=center_is_self, fuse_matmul=fuse_matmul)

    def build(single_buffer_invariants):
        def inv_spec(shape, imap):
            if single_buffer_invariants:
                # Grid-invariant blocks (x changes only with b; weights / bias never):
                # single-buffer them to free VMEM for larger row tiles.
                return pl.BlockSpec(shape, imap, pipeline_mode=pl.Buffered(1))
            return pl.BlockSpec(shape, imap)

        grid_spec = pltpu.PrefetchScalarGridSpec(
            num_scalar_prefetch=1,               # edge-index table -> SMEM scalars
            grid=grid,
            in_specs=[
                inv_spec((None, N, C), lambda b, i, idx: (b, 0, 0)),
                inv_spec((C, O_pad), lambda b, i, idx: (0, 0)),
                inv_spec((C, O_pad), lambda b, i, idx: (0, 0)),
                inv_spec((1, O_pad), lambda b, i, idx: (0, 0)),
            ],
            out_specs=pl.BlockSpec((None, TN, O_pad), lambda b, i, idx: (b, i, 0)),
            scratch_shapes=[pltpu.VMEM((TN, C), jnp.float32)],
        )
        return pl.pallas_call(
            kernel,
            out_shape=jax.ShapeDtypeStruct((B, N, O_pad), jnp.float32),
            grid_spec=grid_spec,
            compiler_params=pltpu.CompilerParams(
                dimension_semantics=("parallel", "parallel"),
                vmem_limit_bytes=vmem_limit),
        )

    try:
        out = jax.block_until_ready(build(True)(idx_flat, x, wx, wr, b2))
    except Exception:
        # pipeline_mode=pl.Buffered(1) unsupported on this JAX version: fall back to the
        # default double-buffering (same math, slightly more VMEM).
        out = build(False)(idx_flat, x, wx, wr, b2)

    out = out[..., :O]                                # drop the zero-padded lanes
    return jnp.transpose(out, (0, 2, 1))[..., None]   # back to PyTorch layout (B, O, N, 1)


def mrconv2d_ref(x_nchw, edge_index, weight, bias):
    """Pure-JAX reference mirroring the PyTorch forward exactly."""
    B, C, N, _ = x_nchw.shape
    xs = x_nchw[..., 0].astype(jnp.float32)                 # (B, C, N)
    gather = jax.vmap(lambda xb, ib: xb[:, ib])             # (C,N),(N,K) -> (C,N,K)
    x_j = gather(xs, edge_index[0])                         # (B, C, N, K)
    x_i = gather(xs, edge_index[1])
    rel = jnp.max(x_j - x_i, axis=-1)                       # (B, C, N)
    feat = jnp.stack([xs, rel], axis=2).reshape(B, 2 * C, N)    # interleaved channels
    out = jnp.einsum('oc,bcn->bon', weight.astype(jnp.float32), feat,
                     precision=jax.lax.Precision.HIGHEST) \
        + bias.astype(jnp.float32)[None, :, None]
    return jnp.maximum(out, 0.0)[..., None]                 # (B, O, N, 1)


if __name__ == "__main__":
    root = jax.random.PRNGKey(0)

    def run_case(seed, B, C, N, K, O, self_center):
        kx, kn, kc, kw, kb = jax.random.split(jax.random.fold_in(root, seed), 5)
        x = jax.random.normal(kx, (B, C, N, 1), dtype=jnp.float32)
        nbr_idx = jax.random.randint(kn, (B, N, K), 0, N, dtype=jnp.int32)
        if self_center:
            ctr_idx = jnp.broadcast_to(
                jnp.arange(N, dtype=jnp.int32)[None, :, None], (B, N, K))
        else:
            ctr_idx = jax.random.randint(kc, (B, N, K), 0, N, dtype=jnp.int32)
        edge_index = jnp.stack([nbr_idx, ctr_idx], axis=0)      # (2, B, N, K)
        weight = 0.1 * jax.random.normal(kw, (O, 2 * C), dtype=jnp.float32)
        bias = 0.1 * jax.random.normal(kb, (O,), dtype=jnp.float32)

        out = jax.block_until_ready(mrconv2d(x, edge_index, weight, bias))
        ref = jax.block_until_ready(mrconv2d_ref(x, edge_index, weight, bias))
        np.testing.assert_allclose(np.asarray(out), np.asarray(ref),
                                   rtol=1e-4, atol=1e-4)

    # 1) ViG hot path: center index is the node itself (specialized gather), small C.
    run_case(0, B=2, C=4, N=16, K=8, O=8, self_center=True)
    # 2) General edge_index (center index varies per neighbor slot).
    run_case(1, B=2, C=4, N=16, K=8, O=8, self_center=False)
    # 3) Lane-aligned channels -> fused single-matmul 1x1-conv path.
    run_case(2, B=1, C=128, N=16, K=4, O=8, self_center=True)

    print("KERNEL_OK")
</pallas_src>

<mosaic_0001>
module attributes {stable_mosaic.version = 11 : i64} {
  func.func @_mrconv2d_kernel(%arg0: i32, %arg1: i32, %arg2: memref<256xi32, #tpu.memory_space<smem>>, %arg3: memref<1x16x4xf32, #tpu.memory_space<vmem>>, %arg4: memref<4x128xf32, #tpu.memory_space<vmem>>, %arg5: memref<4x128xf32, #tpu.memory_space<vmem>>, %arg6: memref<1x128xf32, #tpu.memory_space<vmem>>, %arg7: memref<1x8x128xf32, #tpu.memory_space<vmem>>, %arg8: memref<8x4xf32, #tpu.memory_space<vmem>>) attributes {dimension_semantics = [#tpu.dimension_semantics<parallel>, #tpu.dimension_semantics<parallel>], iteration_bounds = array<i64: 2, 2>, scalar_prefetch = 1 : i64, scratch_operands = 1 : i64, tpu.core_type = #tpu.core_type<tc>, window_params = [{pipeline_mode = #tpu.pipeline_mode<synchronous>, transform_indices = @transform_0, window_bounds = array<i64: 1, 16, 4>}, {pipeline_mode = #tpu.pipeline_mode<synchronous>, transform_indices = @transform_1, window_bounds = array<i64: 4, 128>}, {pipeline_mode = #tpu.pipeline_mode<synchronous>, transform_indices = @transform_2, window_bounds = array<i64: 4, 128>}, {pipeline_mode = #tpu.pipeline_mode<synchronous>, transform_indices = @transform_3, window_bounds = array<i64: 1, 128>}, {transform_indices = @transform_4, window_bounds = array<i64: 1, 8, 128>}]} {
    %c8_i32 = arith.constant 8 : i32
    %0 = arith.muli %arg1, %c8_i32 : i32
    %1 = tpu.assume_multiple %0, 8 : i32
    %c128_i32 = arith.constant 128 : i32
    %2 = arith.muli %arg0, %c128_i32 : i32
    %3 = arith.addi %2, %1 : i32
    %c0_i32 = arith.constant 0 : i32
    %c8_i32_0 = arith.constant 8 : i32
    %4 = arith.addi %c0_i32, %c8_i32_0 : i32
    %c1_i32 = arith.constant 1 : i32
    scf.for %arg9 = %c0_i32 to %4 step %c1_i32  : i32 {
      %23 = arith.addi %3, %arg9 : i32
      %24 = arith.index_cast %23 : i32 to index
      %25 = memref.load %arg2[%24] : memref<256xi32, #tpu.memory_space<smem>>
      %c0_i32_16 = arith.constant 0 : i32
      %c15_i32 = arith.constant 15 : i32
      %26 = arith.maxsi %c0_i32_16, %25 : i32
      %27 = arith.minsi %c15_i32, %26 : i32
      %c0_17 = arith.constant 0 : index
      %28 = arith.index_cast %27 : i32 to index
      %c0_18 = arith.constant 0 : index
      %29 = vector.load %arg3[%c0_17, %28, %c0_18] : memref<1x16x4xf32, #tpu.memory_space<vmem>>, vector<1x1x4xf32>
      %30 = vector.shape_cast %29 : vector<1x1x4xf32> to vector<1x4xf32>
      %c16_i32 = arith.constant 16 : i32
      %31 = arith.addi %3, %c16_i32 : i32
      %32 = arith.addi %31, %arg9 : i32
      %33 = arith.index_cast %32 : i32 to index
      %34 = memref.load %arg2[%33] : memref<256xi32, #tpu.memory_space<smem>>
      %c0_i32_19 = arith.constant 0 : i32
      %c15_i32_20 = arith.constant 15 : i32
      %35 = arith.maxsi %c0_i32_19, %34 : i32
      %36 = arith.minsi %c15_i32_20, %35 : i32
      %c0_21 = arith.constant 0 : index
      %37 = arith.index_cast %36 : i32 to index
      %c0_22 = arith.constant 0 : index
      %38 = vector.load %arg3[%c0_21, %37, %c0_22] : memref<1x16x4xf32, #tpu.memory_space<vmem>>, vector<1x1x4xf32>
      %39 = vector.shape_cast %38 : vector<1x1x4xf32> to vector<1x4xf32>
      %40 = arith.maximumf %30, %39 : vector<1x4xf32>
      %c32_i32 = arith.constant 32 : i32
      %41 = arith.addi %3, %c32_i32 : i32
      %42 = arith.addi %41, %arg9 : i32
      %43 = arith.index_cast %42 : i32 to index
      %44 = memref.load %arg2[%43] : memref<256xi32, #tpu.memory_space<smem>>
      %c0_i32_23 = arith.constant 0 : i32
      %c15_i32_24 = arith.constant 15 : i32
      %45 = arith.maxsi %c0_i32_23, %44 : i32
      %46 = arith.minsi %c15_i32_24, %45 : i32
      %c0_25 = arith.constant 0 : index
      %47 = arith.index_cast %46 : i32 to index
      %c0_26 = arith.constant 0 : index
      %48 = vector.load %arg3[%c0_25, %47, %c0_26] : memref<1x16x4xf32, #tpu.memory_space<vmem>>, vector<1x1x4xf32>
      %49 = vector.shape_cast %48 : vector<1x1x4xf32> to vector<1x4xf32>
      %50 = arith.maximumf %40, %49 : vector<1x4xf32>
      %c48_i32 = arith.constant 48 : i32
      %51 = arith.addi %3, %c48_i32 : i32
      %52 = arith.addi %51, %arg9 : i32
      %53 = arith.index_cast %52 : i32 to index
      %54 = memref.load %arg2[%53] : memref<256xi32, #tpu.memory_space<smem>>
      %c0_i32_27 = arith.constant 0 : i32
      %c15_i32_28 = arith.constant 15 : i32
      %55 = arith.maxsi %c0_i32_27, %54 : i32
      %56 = arith.minsi %c15_i32_28, %55 : i32
      %c0_29 = arith.constant 0 : index
      %57 = arith.index_cast %56 : i32 to index
      %c0_30 = arith.constant 0 : index
      %58 = vector.load %arg3[%c0_29, %57, %c0_30] : memref<1x16x4xf32, #tpu.memory_space<vmem>>, vector<1x1x4xf32>
      %59 = vector.shape_cast %58 : vector<1x1x4xf32> to vector<1x4xf32>
      %60 = arith.maximumf %50, %59 : vector<1x4xf32>
      %c64_i32 = arith.constant 64 : i32
      %61 = arith.addi %3, %c64_i32 : i32
      %62 = arith.addi %61, %arg9 : i32
      %63 = arith.index_cast %62 : i32 to index
      %64 = memref.load %arg2[%63] : memref<256xi32, #tpu.memory_space<smem>>
      %c0_i32_31 = arith.constant 0 : i32
      %c15_i32_32 = arith.constant 15 : i32
      %65 = arith.maxsi %c0_i32_31, %64 : i32
      %66 = arith.minsi %c15_i32_32, %65 : i32
      %c0_33 = arith.constant 0 : index
      %67 = arith.index_cast %66 : i32 to index
      %c0_34 = arith.constant 0 : index
      %68 = vector.load %arg3[%c0_33, %67, %c0_34] : memref<1x16x4xf32, #tpu.memory_space<vmem>>, vector<1x1x4xf32>
      %69 = vector.shape_cast %68 : vector<1x1x4xf32> to vector<1x4xf32>
      %70 = arith.maximumf %60, %69 : vector<1x4xf32>
      %c80_i32 = arith.constant 80 : i32
      %71 = arith.addi %3, %c80_i32 : i32
      %72 = arith.addi %71, %arg9 : i32
      %73 = arith.index_cast %72 : i32 to index
      %74 = memref.load %arg2[%73] : memref<256xi32, #tpu.memory_space<smem>>
      %c0_i32_35 = arith.constant 0 : i32
      %c15_i32_36 = arith.constant 15 : i32
      %75 = arith.maxsi %c0_i32_35, %74 : i32
      %76 = arith.minsi %c15_i32_36, %75 : i32
      %c0_37 = arith.constant 0 : index
      %77 = arith.index_cast %76 : i32 to index
      %c0_38 = arith.constant 0 : index
      %78 = vector.load %arg3[%c0_37, %77, %c0_38] : memref<1x16x4xf32, #tpu.memory_space<vmem>>, vector<1x1x4xf32>
      %79 = vector.shape_cast %78 : vector<1x1x4xf32> to vector<1x4xf32>
      %80 = arith.maximumf %70, %79 : vector<1x4xf32>
      %c96_i32 = arith.constant 96 : i32
      %81 = arith.addi %3, %c96_i32 : i32
      %82 = arith.addi %81, %arg9 : i32
      %83 = arith.index_cast %82 : i32 to index
      %84 = memref.load %arg2[%83] : memref<256xi32, #tpu.memory_space<smem>>
      %c0_i32_39 = arith.constant 0 : i32
      %c15_i32_40 = arith.constant 15 : i32
      %85 = arith.maxsi %c0_i32_39, %84 : i32
      %86 = arith.minsi %c15_i32_40, %85 : i32
      %c0_41 = arith.constant 0 : index
      %87 = arith.index_cast %86 : i32 to index
      %c0_42 = arith.constant 0 : index
      %88 = vector.load %arg3[%c0_41, %87, %c0_42] : memref<1x16x4xf32, #tpu.memory_space<vmem>>, vector<1x1x4xf32>
      %89 = vector.shape_cast %88 : vector<1x1x4xf32> to vector<1x4xf32>
      %90 = arith.maximumf %80, %89 : vector<1x4xf32>
      %c112_i32 = arith.constant 112 : i32
      %91 = arith.addi %3, %c112_i32 : i32
      %92 = arith.addi %91, %arg9 : i32
      %93 = arith.index_cast %92 : i32 to index
      %94 = memref.load %arg2[%93] : memref<256xi32, #tpu.memory_space<smem>>
      %c0_i32_43 = arith.constant 0 : i32
      %c15_i32_44 = arith.constant 15 : i32
      %95 = arith.maxsi %c0_i32_43, %94 : i32
      %96 = arith.minsi %c15_i32_44, %95 : i32
      %c0_45 = arith.constant 0 : index
      %97 = arith.index_cast %96 : i32 to index
      %c0_46 = arith.constant 0 : index
      %98 = vector.load %arg3[%c0_45, %97, %c0_46] : memref<1x16x4xf32, #tpu.memory_space<vmem>>, vector<1x1x4xf32>
      %99 = vector.shape_cast %98 : vector<1x1x4xf32> to vector<1x4xf32>
      %100 = arith.maximumf %90, %99 : vector<1x4xf32>
      %101 = arith.index_cast %arg9 : i32 to index
      %c0_47 = arith.constant 0 : index
      %102 = vector.load %arg8[%101, %c0_47] : memref<8x4xf32, #tpu.memory_space<vmem>>, vector<1x4xf32>
      tpu.vector_store %arg8[%101, %c0_47], %100 {strides = array<i32>} : memref<8x4xf32, #tpu.memory_space<vmem>>, vector<1x4xf32>,
    }
    %c8_i32_1 = arith.constant 8 : i32
    %c0 = arith.constant 0 : index
    %5 = arith.index_cast %1 : i32 to index
    %c0_2 = arith.constant 0 : index
    %6 = vector.load %arg3[%c0, %5, %c0_2] : memref<1x16x4xf32, #tpu.memory_space<vmem>>, vector<1x8x4xf32>
    %7 = vector.shape_cast %6 : vector<1x8x4xf32> to vector<8x4xf32>
    %c0_3 = arith.constant 0 : index
    %c0_4 = arith.constant 0 : index
    %8 = vector.load %arg8[%c0_3, %c0_4] : memref<8x4xf32, #tpu.memory_space<vmem>>, vector<8x4xf32>
    %9 = arith.subf %8, %7 : vector<8x4xf32>
    %c0_5 = arith.constant 0 : index
    %c0_6 = arith.constant 0 : index
    %10 = vector.load %arg4[%c0_5, %c0_6] : memref<4x128xf32, #tpu.memory_space<vmem>>, vector<4x128xf32>
    %cst = arith.constant dense<0.000000e+00> : vector<8x128xf32>
    %11 = tpu.matmul %7, %10, %cst {dimension_numbers = #tpu.dot_dimension_numbers<[1], [0], [0], [1], [0, 0, 1, 1], [], []>} : vector<8x4xf32>, vector<4x128xf32>, vector<8x128xf32> -> vector<8x128xf32>
    %c0_7 = arith.constant 0 : index
    %c0_8 = arith.constant 0 : index
    %12 = vector.load %arg5[%c0_7, %c0_8] : memref<4x128xf32, #tpu.memory_space<vmem>>, vector<4x128xf32>
    %cst_9 = arith.constant dense<0.000000e+00> : vector<8x128xf32>
    %13 = tpu.matmul %9, %12, %cst_9 {dimension_numbers = #tpu.dot_dimension_numbers<[1], [0], [0], [1], [0, 0, 1, 1], [], []>} : vector<8x4xf32>, vector<4x128xf32>, vector<8x128xf32> -> vector<8x128xf32>
    %14 = arith.addf %11, %13 : vector<8x128xf32>
    %c0_10 = arith.constant 0 : index
    %c0_11 = arith.constant 0 : index
    %15 = vector.load %arg6[%c0_10, %c0_11] : memref<1x128xf32, #tpu.memory_space<vmem>>, vector<1x128xf32>
    %16 = vector.broadcast %15 : vector<1x128xf32> to vector<8x128xf32>
    %17 = arith.addf %14, %16 : vector<8x128xf32>
    %cst_12 = arith.constant 0.000000e+00 : f32
    %18 = vector.broadcast %cst_12 : f32 to vector<8x128xf32>
    %19 = arith.maximumf %17, %18 : vector<8x128xf32>
    %c0_13 = arith.constant 0 : index
    %c0_14 = arith.constant 0 : index
    %c0_15 = arith.constant 0 : index
    %20 = vector.load %arg7[%c0_13, %c0_14, %c0_15] : memref<1x8x128xf32, #tpu.memory_space<vmem>>, vector<1x8x128xf32>
    %21 = vector.shape_cast %20 : vector<1x8x128xf32> to vector<8x128xf32>
    %22 = vector.shape_cast %19 : vector<8x128xf32> to vector<1x8x128xf32>
    tpu.vector_store %arg7[%c0_13, %c0_14, %c0_15], %22 {strides = array<i32>} : memref<1x8x128xf32, #tpu.memory_space<vmem>>, vector<1x8x128xf32>,
    return
  }
  func.func @transform_0(%arg0: i32, %arg1: i32, %arg2: memref<256xi32, #tpu.memory_space<smem>>) -> (i32, i32, i32) {
    %c0_i32 = arith.constant 0 : i32
    %c0_i32_0 = arith.constant 0 : i32
    %c0_i32_1 = arith.constant 0 : i32
    return %arg0, %c0_i32, %c0_i32_0 : i32, i32, i32
  }
  func.func @transform_1(%arg0: i32, %arg1: i32, %arg2: memref<256xi32, #tpu.memory_space<smem>>) -> (i32, i32) {
    %c0_i32 = arith.constant 0 : i32
    %c0_i32_0 = arith.constant 0 : i32
    %c0_i32_1 = arith.constant 0 : i32
    return %c0_i32, %c0_i32_0 : i32, i32
  }
  func.func @transform_2(%arg0: i32, %arg1: i32, %arg2: memref<256xi32, #tpu.memory_space<smem>>) -> (i32, i32) {
    %c0_i32 = arith.constant 0 : i32
    %c0_i32_0 = arith.constant 0 : i32
    %c0_i32_1 = arith.constant 0 : i32
    return %c0_i32, %c0_i32_0 : i32, i32
  }
  func.func @transform_3(%arg0: i32, %arg1: i32, %arg2: memref<256xi32, #tpu.memory_space<smem>>) -> (i32, i32) {
    %c0_i32 = arith.constant 0 : i32
    %c0_i32_0 = arith.constant 0 : i32
    %c0_i32_1 = arith.constant 0 : i32
    return %c0_i32, %c0_i32_0 : i32, i32
  }
  func.func @transform_4(%arg0: i32, %arg1: i32, %arg2: memref<256xi32, #tpu.memory_space<smem>>) -> (i32, i32, i32) {
    %c0_i32 = arith.constant 0 : i32
    %c0_i32_0 = arith.constant 0 : i32
    return %arg0, %arg1, %c0_i32 : i32, i32, i32
  }
}

module attributes {stable_mosaic.version = 11 : i64} {
  func.func @_mrconv2d_kernel(%arg0: i32, %arg1: i32, %arg2: memref<256xi32, #tpu.memory_space<smem>>, %arg3: memref<1x16x4xf32, #tpu.memory_space<vmem>>, %arg4: memref<4x128xf32, #tpu.memory_space<vmem>>, %arg5: memref<4x128xf32, #tpu.memory_space<vmem>>, %arg6: memref<1x128xf32, #tpu.memory_space<vmem>>, %arg7: memref<1x8x128xf32, #tpu.memory_space<vmem>>, %arg8: memref<8x4xf32, #tpu.memory_space<vmem>>) attributes {dimension_semantics = [#tpu.dimension_semantics<parallel>, #tpu.dimension_semantics<parallel>], iteration_bounds = array<i64: 2, 2>, scalar_prefetch = 1 : i64, scratch_operands = 1 : i64, tpu.core_type = #tpu.core_type<tc>, window_params = [{transform_indices = @transform_0, window_bounds = array<i64: 1, 16, 4>}, {pipeline_mode = #tpu.pipeline_mode<synchronous>, transform_indices = @transform_1, window_bounds = array<i64: 4, 128>}, {pipeline_mode = #tpu.pipeline_mode<synchronous>, transform_indices = @transform_2, window_bounds = array<i64: 4, 128>}, {pipeline_mode = #tpu.pipeline_mode<synchronous>, transform_indices = @transform_3, window_bounds = array<i64: 1, 128>}, {transform_indices = @transform_4, window_bounds = array<i64: 1, 8, 128>}]} {
    %c8_i32 = arith.constant 8 : i32
    %0 = arith.muli %arg1, %c8_i32 : i32
    %1 = tpu.assume_multiple %0, 8 : i32
    %c128_i32 = arith.constant 128 : i32
    %2 = arith.muli %arg0, %c128_i32 : i32
    %3 = arith.addi %2, %1 : i32
    %c0_i32 = arith.constant 0 : i32
    %c8_i32_0 = arith.constant 8 : i32
    %4 = arith.addi %c0_i32, %c8_i32_0 : i32
    %c1_i32 = arith.constant 1 : i32
    scf.for %arg9 = %c0_i32 to %4 step %c1_i32  : i32 {
      %23 = arith.addi %3, %arg9 : i32
      %24 = arith.index_cast %23 : i32 to index
      %25 = memref.load %arg2[%24] : memref<256xi32, #tpu.memory_space<smem>>
      %c0_i32_16 = arith.constant 0 : i32
      %c15_i32 = arith.constant 15 : i32
      %26 = arith.maxsi %c0_i32_16, %25 : i32
      %27 = arith.minsi %c15_i32, %26 : i32
      %c0_17 = arith.constant 0 : index
      %28 = arith.index_cast %27 : i32 to index
      %c0_18 = arith.constant 0 : index
      %29 = vector.load %arg3[%c0_17, %28, %c0_18] : memref<1x16x4xf32, #tpu.memory_space<vmem>>, vector<1x1x4xf32>
      %30 = vector.shape_cast %29 : vector<1x1x4xf32> to vector<1x4xf32>
      %c16_i32 = arith.constant 16 : i32
      %31 = arith.addi %3, %c16_i32 : i32
      %32 = arith.addi %31, %arg9 : i32
      %33 = arith.index_cast %32 : i32 to index
      %34 = memref.load %arg2[%33] : memref<256xi32, #tpu.memory_space<smem>>
      %c0_i32_19 = arith.constant 0 : i32
      %c15_i32_20 = arith.constant 15 : i32
      %35 = arith.maxsi %c0_i32_19, %34 : i32
      %36 = arith.minsi %c15_i32_20, %35 : i32
      %c0_21 = arith.constant 0 : index
      %37 = arith.index_cast %36 : i32 to index
      %c0_22 = arith.constant 0 : index
      %38 = vector.load %arg3[%c0_21, %37, %c0_22] : memref<1x16x4xf32, #tpu.memory_space<vmem>>, vector<1x1x4xf32>
      %39 = vector.shape_cast %38 : vector<1x1x4xf32> to vector<1x4xf32>
      %40 = arith.maximumf %30, %39 : vector<1x4xf32>
      %c32_i32 = arith.constant 32 : i32
      %41 = arith.addi %3, %c32_i32 : i32
      %42 = arith.addi %41, %arg9 : i32
      %43 = arith.index_cast %42 : i32 to index
      %44 = memref.load %arg2[%43] : memref<256xi32, #tpu.memory_space<smem>>
      %c0_i32_23 = arith.constant 0 : i32
      %c15_i32_24 = arith.constant 15 : i32
      %45 = arith.maxsi %c0_i32_23, %44 : i32
      %46 = arith.minsi %c15_i32_24, %45 : i32
      %c0_25 = arith.constant 0 : index
      %47 = arith.index_cast %46 : i32 to index
      %c0_26 = arith.constant 0 : index
      %48 = vector.load %arg3[%c0_25, %47, %c0_26] : memref<1x16x4xf32, #tpu.memory_space<vmem>>, vector<1x1x4xf32>
      %49 = vector.shape_cast %48 : vector<1x1x4xf32> to vector<1x4xf32>
      %50 = arith.maximumf %40, %49 : vector<1x4xf32>
      %c48_i32 = arith.constant 48 : i32
      %51 = arith.addi %3, %c48_i32 : i32
      %52 = arith.addi %51, %arg9 : i32
      %53 = arith.index_cast %52 : i32 to index
      %54 = memref.load %arg2[%53] : memref<256xi32, #tpu.memory_space<smem>>
      %c0_i32_27 = arith.constant 0 : i32
      %c15_i32_28 = arith.constant 15 : i32
      %55 = arith.maxsi %c0_i32_27, %54 : i32
      %56 = arith.minsi %c15_i32_28, %55 : i32
      %c0_29 = arith.constant 0 : index
      %57 = arith.index_cast %56 : i32 to index
      %c0_30 = arith.constant 0 : index
      %58 = vector.load %arg3[%c0_29, %57, %c0_30] : memref<1x16x4xf32, #tpu.memory_space<vmem>>, vector<1x1x4xf32>
      %59 = vector.shape_cast %58 : vector<1x1x4xf32> to vector<1x4xf32>
      %60 = arith.maximumf %50, %59 : vector<1x4xf32>
      %c64_i32 = arith.constant 64 : i32
      %61 = arith.addi %3, %c64_i32 : i32
      %62 = arith.addi %61, %arg9 : i32
      %63 = arith.index_cast %62 : i32 to index
      %64 = memref.load %arg2[%63] : memref<256xi32, #tpu.memory_space<smem>>
      %c0_i32_31 = arith.constant 0 : i32
      %c15_i32_32 = arith.constant 15 : i32
      %65 = arith.maxsi %c0_i32_31, %64 : i32
      %66 = arith.minsi %c15_i32_32, %65 : i32
      %c0_33 = arith.constant 0 : index
      %67 = arith.index_cast %66 : i32 to index
      %c0_34 = arith.constant 0 : index
      %68 = vector.load %arg3[%c0_33, %67, %c0_34] : memref<1x16x4xf32, #tpu.memory_space<vmem>>, vector<1x1x4xf32>
      %69 = vector.shape_cast %68 : vector<1x1x4xf32> to vector<1x4xf32>
      %70 = arith.maximumf %60, %69 : vector<1x4xf32>
      %c80_i32 = arith.constant 80 : i32
      %71 = arith.addi %3, %c80_i32 : i32
      %72 = arith.addi %71, %arg9 : i32
      %73 = arith.index_cast %72 : i32 to index
      %74 = memref.load %arg2[%73] : memref<256xi32, #tpu.memory_space<smem>>
      %c0_i32_35 = arith.constant 0 : i32
      %c15_i32_36 = arith.constant 15 : i32
      %75 = arith.maxsi %c0_i32_35, %74 : i32
      %76 = arith.minsi %c15_i32_36, %75 : i32
      %c0_37 = arith.constant 0 : index
      %77 = arith.index_cast %76 : i32 to index
      %c0_38 = arith.constant 0 : index
      %78 = vector.load %arg3[%c0_37, %77, %c0_38] : memref<1x16x4xf32, #tpu.memory_space<vmem>>, vector<1x1x4xf32>
      %79 = vector.shape_cast %78 : vector<1x1x4xf32> to vector<1x4xf32>
      %80 = arith.maximumf %70, %79 : vector<1x4xf32>
      %c96_i32 = arith.constant 96 : i32
      %81 = arith.addi %3, %c96_i32 : i32
      %82 = arith.addi %81, %arg9 : i32
      %83 = arith.index_cast %82 : i32 to index
      %84 = memref.load %arg2[%83] : memref<256xi32, #tpu.memory_space<smem>>
      %c0_i32_39 = arith.constant 0 : i32
      %c15_i32_40 = arith.constant 15 : i32
      %85 = arith.maxsi %c0_i32_39, %84 : i32
      %86 = arith.minsi %c15_i32_40, %85 : i32
      %c0_41 = arith.constant 0 : index
      %87 = arith.index_cast %86 : i32 to index
      %c0_42 = arith.constant 0 : index
      %88 = vector.load %arg3[%c0_41, %87, %c0_42] : memref<1x16x4xf32, #tpu.memory_space<vmem>>, vector<1x1x4xf32>
      %89 = vector.shape_cast %88 : vector<1x1x4xf32> to vector<1x4xf32>
      %90 = arith.maximumf %80, %89 : vector<1x4xf32>
      %c112_i32 = arith.constant 112 : i32
      %91 = arith.addi %3, %c112_i32 : i32
      %92 = arith.addi %91, %arg9 : i32
      %93 = arith.index_cast %92 : i32 to index
      %94 = memref.load %arg2[%93] : memref<256xi32, #tpu.memory_space<smem>>
      %c0_i32_43 = arith.constant 0 : i32
      %c15_i32_44 = arith.constant 15 : i32
      %95 = arith.maxsi %c0_i32_43, %94 : i32
      %96 = arith.minsi %c15_i32_44, %95 : i32
      %c0_45 = arith.constant 0 : index
      %97 = arith.index_cast %96 : i32 to index
      %c0_46 = arith.constant 0 : index
      %98 = vector.load %arg3[%c0_45, %97, %c0_46] : memref<1x16x4xf32, #tpu.memory_space<vmem>>, vector<1x1x4xf32>
      %99 = vector.shape_cast %98 : vector<1x1x4xf32> to vector<1x4xf32>
      %100 = arith.maximumf %90, %99 : vector<1x4xf32>
      %101 = arith.index_cast %arg9 : i32 to index
      %c0_47 = arith.constant 0 : index
      %102 = vector.load %arg8[%101, %c0_47] : memref<8x4xf32, #tpu.memory_space<vmem>>, vector<1x4xf32>
      tpu.vector_store %arg8[%101, %c0_47], %100 {strides = array<i32>} : memref<8x4xf32, #tpu.memory_space<vmem>>, vector<1x4xf32>,
    }
    %c8_i32_1 = arith.constant 8 : i32
    %c0 = arith.constant 0 : index
    %5 = arith.index_cast %1 : i32 to index
    %c0_2 = arith.constant 0 : index
    %6 = vector.load %arg3[%c0, %5, %c0_2] : memref<1x16x4xf32, #tpu.memory_space<vmem>>, vector<1x8x4xf32>
    %7 = vector.shape_cast %6 : vector<1x8x4xf32> to vector<8x4xf32>
    %c0_3 = arith.constant 0 : index
    %c0_4 = arith.constant 0 : index
    %8 = vector.load %arg8[%c0_3, %c0_4] : memref<8x4xf32, #tpu.memory_space<vmem>>, vector<8x4xf32>
    %9 = arith.subf %8, %7 : vector<8x4xf32>
    %c0_5 = arith.constant 0 : index
    %c0_6 = arith.constant 0 : index
    %10 = vector.load %arg4[%c0_5, %c0_6] : memref<4x128xf32, #tpu.memory_space<vmem>>, vector<4x128xf32>
    %cst = arith.constant dense<0.000000e+00> : vector<8x128xf32>
    %11 = tpu.matmul %7, %10, %cst {dimension_numbers = #tpu.dot_dimension_numbers<[1], [0], [0], [1], [0, 0, 1, 1], [], []>} : vector<8x4xf32>, vector<4x128xf32>, vector<8x128xf32> -> vector<8x128xf32>
    %c0_7 = arith.constant 0 : index
    %c0_8 = arith.constant 0 : index
    %12 = vector.load %arg5[%c0_7, %c0_8] : memref<4x128xf32, #tpu.memory_space<vmem>>, vector<4x128xf32>
    %cst_9 = arith.constant dense<0.000000e+00> : vector<8x128xf32>
    %13 = tpu.matmul %9, %12, %cst_9 {dimension_numbers = #tpu.dot_dimension_numbers<[1], [0], [0], [1], [0, 0, 1, 1], [], []>} : vector<8x4xf32>, vector<4x128xf32>, vector<8x128xf32> -> vector<8x128xf32>
    %14 = arith.addf %11, %13 : vector<8x128xf32>
    %c0_10 = arith.constant 0 : index
    %c0_11 = arith.constant 0 : index
    %15 = vector.load %arg6[%c0_10, %c0_11] : memref<1x128xf32, #tpu.memory_space<vmem>>, vector<1x128xf32>
    %16 = vector.broadcast %15 : vector<1x128xf32> to vector<8x128xf32>
    %17 = arith.addf %14, %16 : vector<8x128xf32>
    %cst_12 = arith.constant 0.000000e+00 : f32
    %18 = vector.broadcast %cst_12 : f32 to vector<8x128xf32>
    %19 = arith.maximumf %17, %18 : vector<8x128xf32>
    %c0_13 = arith.constant 0 : index
    %c0_14 = arith.constant 0 : index
    %c0_15 = arith.constant 0 : index
    %20 = vector.load %arg7[%c0_13, %c0_14, %c0_15] : memref<1x8x128xf32, #tpu.memory_space<vmem>>, vector<1x8x128xf32>
    %21 = vector.shape_cast %20 : vector<1x8x128xf32> to vector<8x128xf32>
    %22 = vector.shape_cast %19 : vector<8x128xf32> to vector<1x8x128xf32>
    tpu.vector_store %arg7[%c0_13, %c0_14, %c0_15], %22 {strides = array<i32>} : memref<1x8x128xf32, #tpu.memory_space<vmem>>, vector<1x8x128xf32>,
    return
  }
  func.func @transform_0(%arg0: i32, %arg1: i32, %arg2: memref<256xi32, #tpu.memory_space<smem>>) -> (i32, i32, i32) {
    %c0_i32 = arith.constant 0 : i32
    %c0_i32_0 = arith.constant 0 : i32
    %c0_i32_1 = arith.constant 0 : i32
    return %arg0, %c0_i32, %c0_i32_0 : i32, i32, i32
  }
  func.func @transform_1(%arg0: i32, %arg1: i32, %arg2: memref<256xi32, #tpu.memory_space<smem>>) -> (i32, i32) {
    %c0_i32 = arith.constant 0 : i32
    %c0_i32_0 = arith.constant 0 : i32
    %c0_i32_1 = arith.constant 0 : i32
    return %c0_i32, %c0_i32_0 : i32, i32
  }
  func.func @transform_2(%arg0: i32, %arg1: i32, %arg2: memref<256xi32, #tpu.memory_space<smem>>) -> (i32, i32) {
    %c0_i32 = arith.constant 0 : i32
    %c0_i32_0 = arith.constant 0 : i32
    %c0_i32_1 = arith.constant 0 : i32
    return %c0_i32, %c0_i32_0 : i32, i32
  }
  func.func @transform_3(%arg0: i32, %arg1: i32, %arg2: memref<256xi32, #tpu.memory_space<smem>>) -> (i32, i32) {
    %c0_i32 = arith.constant 0 : i32
    %c0_i32_0 = arith.constant 0 : i32
    %c0_i32_1 = arith.constant 0 : i32
    return %c0_i32, %c0_i32_0 : i32, i32
  }
  func.func @transform_4(%arg0: i32, %arg1: i32, %arg2: memref<256xi32, #tpu.memory_space<smem>>) -> (i32, i32, i32) {
    %c0_i32 = arith.constant 0 : i32
    %c0_i32_0 = arith.constant 0 : i32
    return %arg0, %arg1, %c0_i32 : i32, i32, i32
  }
}

</mosaic_0001>

<bundles_post_ra>
// kernel: tpu_custom_call.1
= control target key start
LH: loop header
LB: loop body
LE: loop exit
PB: predicated region body
PF: predicated region fallthrough
CT: control target
= control target key end

     0   :  { %s1100_s0 = inlined_call_operand.vmem [shape: s32[256], index: 0, kind: input, shape index: {}]   ;;  %s1101_s1 = inlined_call_operand.vmem [shape: f32[2,16,4], index: 1, kind: input, shape index: {}]   ;;  %s1102_s2 = inlined_call_operand.vmem [shape: f32[4,128], index: 2, kind: input, shape index: {}]   ;;  %s1103_s3 = inlined_call_operand.vmem [shape: f32[4,128], index: 3, kind: input, shape index: {}]   ;;  %s1104_s4 = inlined_call_operand.vmem [shape: f32[1,128], index: 4, kind: input, shape index: {}]   ;;  %s1105_s5 = inlined_call_operand.hbm [shape: f32[2,16,128], index: 5, kind: output, shape index: {}]  }
   0x1   :  { %1113 = sst [smem:[#allocation15_spill]] %s1101_s1  ;;  %s10_s20 = sshll.u32 %s1100_s0, 4  ;;  %s11_s20 = int_to_ptr.vmem [resolvable:$true] %s10_s20 }
   0x2   :  { %s756_s21 = scalar_lea.vmem %s11_s20, 32  ;;  %p761_p1 = scmp.lt.s32.totalorder %s11_s20, %s11_s20 }
   0x3   :  { %p757_p0 = scmp.ne.s32.totalorder %s11_s20, %s756_s21  ;;  %p762_p2 = scmp.lt.s32.totalorder %s756_s21, %s756_s21 }
   0x5   :  { %p763_p3 = por %p762_p2, %p761_p1 }
   0x7   :  { %p764_p4 = pnand %p763_p3, %p757_p0 }
   0x9   :  { %767 = shalt.err (!%p764_p4)  }
   0xa   :  { %s872_s22 = smov [#allocation4]  }
   0xb   :  { %13 = dma.vmem_to_smem %s11_s20, 32, %s872_s22, [#allocation3] }
   0xc   :  { %830 = dma.done.wait [#allocation3], 32 }
   0xd   :  { %831 = vsyncadd [#allocation3], 4294967264 }
   0xe   :  { %15 = sfence }
   0xf   :  { %16 = vsyncpa [#allocation6], 0 }
  0x10   :  { %18 = vsyncpa [#allocation6 + $0x1], 0  ;;  %s909_s23 = smov 0   ;;  %s911_s24 = smov 0  }
  0x11   :  { %s913_s0 = smov 0   ;;  %s915_s25 = smov 0  }
  0x12   :  { %s917_s26 = smov 0   ;;  %s919_s27 = smov 0  }
  0x13   :  { %s921_s28 = smov 0   ;;  %s923_s29 = smov 0  }
  0x14 LB: > { %1114 = sst [smem:[#allocation9_spill]] %s846_s0  ;;  %s584_s30 = sadd.s32 4294967295, %s866_s29   ;;  %s866_s29 = sphi %s923_s29, %s24_s29   ;;  %s862_s28 = sphi %s921_s28, %s1132_s28   ;;  %s858_s27 = sphi %s919_s27, %s1131_s27   ;;  %s854_s26 = sphi %s917_s26, %s1130_s26   ;;  %s850_s25 = sphi %s915_s25, %s1129_s25   ;;  %s846_s0 = sphi %s913_s0, %s1128_s0   ;;  %s842_s24 = sphi %s911_s24, %s1134_s24   ;;  %s838_s23 = sphi %s909_s23, %s1133_s23  }
  0x15   : > { %1115 = sst [smem:[#allocation10_spill]] %s858_s27  ;;  %s585_s6 = sadd.s32 4294967294, %s866_s29  }
  0x16   : > { %1116 = sst [smem:[#allocation11_spill]] %s862_s28  ;;  %s33_s7 = sadd.s32 1, %s858_s27 }
  0x17   : > { %p34_p5 = scmp.ge.s32.totalorder %s33_s7, 2  ;;  %s36_s8 = sadd.s32 1, %s862_s28 }
  0x18   : > { %p144_p6 = scmp.ne.s32.totalorder %s846_s0, %s842_s24  ;;  %p145_p7 = scmp.eq.s32.totalorder %s584_s30, 3 }
  0x19   : > { %s1136_s7 = smov (%p34_p5, %s33_s7), 0  ;;  %s1138_s8 = smov (!%p34_p5, %s36_s8), %s862_s28 }
  0x1a   : > { %1117 = sst [smem:[#allocation12_spill]] %s1136_s7  ;;  %s130_s9 = ssub.s32 %s858_s27, %s1136_s7 }
  0x1b   : > { %p960_p8 = por %p145_p7, %p144_p6  ;;  %p38_p9 = scmp.ge.s32.totalorder %s1138_s8, 2 }
  0x1c   : > { %p150_p10 = scmp.ne.s32.totalorder %s842_s24, %s838_s23  ;;  %p151_p11 = scmp.eq.s32.totalorder %s585_s6, 3 }
  0x1d   : > { %p587_p12 = scmp.ge.s32.totalorder %s866_s29, 1  ;;  %s1140_s8 = smov (%p38_p9, %s1138_s8), 0 }
  0x1e   : > { %1119 = sst [smem:[#allocation13_spill]] %s1140_s8  ;;  %p969_p13 = por %p151_p11, %p150_p10 }
  0x1f   : > { %p186_p0 = scmp.lt.s32.totalorder %s866_s29, 5  ;;  %s129_s12 = ssub.s32 %s862_s28, %s1140_s8 }
  0x20   : > { %s134_s13 = sadd.s32 1, %s846_s0  ;;  %s131_s14 = sor.u32 %s130_s9, %s129_s12 }
  0x21   : > { %p187_p1 = pnand %p587_p12, %p186_p0  ;;  %p132_p2 = scmp.eq.s32.totalorder %s131_s14, 0 }
  0x22   : > { %s1106_s16 = sand.u32 (!%p187_p1), 1, %s842_s24   ;;  %p212_p3 = scmp.lt.s32.totalorder (!%p187_p1), %s854_s26, 1 }
  0x23   : > { %s978_s15 = scalar_select %p132_p2, %s846_s0, %s134_s13  }
  0x24   : > { %190 = sbr.rel (%p187_p1) target bundleno = 307 (0x133), region = 36  ;;  %s984_s17 = sshll.u32 (!%p187_p1), %s1106_s16, 3 }
  0x25   : > { %1121 = sst [smem:[#allocation14_spill]] %s978_s15  ;;  %s1107_s18 = sshll.u32 (!%p187_p1), %s850_s25, 3 }
  0x26   : > { %s592_s19 = sshll.u32 (!%p187_p1), %s854_s26, 7  ;;  %s1122_s1 = sld [smem:[#allocation15_spill]] (!%p187_p1) }
  0x27   : > { %s991_s21 = sadd.s32 (!%p187_p1), %s592_s19, %s1107_s18  ;;  %s999_s13 = smov (!%p187_p1), 0  }
  0x29   : > { %s213_s20 = scalar_select %p212_p3, %s854_s26, 1 }
  0x2b   : > { %s643_s22 = sshll.u32 %s213_s20, 4 }
  0x2c   : > { %s996_s9 = scalar_lea.vmem %s1122_s1, %s643_s22 }
  0x2d LB: >> { %s234_s14 = sadd.s32 16, %s991_s21  ;;  %s244_s19 = sadd.s32 32, %s991_s21  ;;  %vm305_vm0 = vcmask 24576   ;;  %s870_s13 = sphi %s999_s13, %s225_s13  }
  0x2e   : >> { %s226_s20 = sadd.s32 %s870_s13, %s991_s21  ;;  %s235_s22 = sadd.s32 %s870_s13, %s234_s14 }
  0x2f   : >> { %s227_s30 = sld [smem:[#allocation4 + %s226_s20]]  ;;  %s245_s6 = sadd.s32 %s870_s13, %s244_s19 }
  0x30   : >> { %s236_s16 = sld [smem:[#allocation4 + %s235_s22]]  ;;  %s254_s12 = sadd.s32 48, %s991_s21 }
  0x31   : >> { %s246_s18 = sld [smem:[#allocation4 + %s245_s6]]  ;;  %s255_s1 = sadd.s32 %s870_s13, %s254_s12 }
  0x32   : >> { %s256_s8 = sld [smem:[#allocation4 + %s255_s1]]  ;;  %s264_s7 = sadd.s32 64, %s991_s21 }
  0x33   : >> { %s265_s28 = sadd.s32 %s870_s13, %s264_s7  ;;  %s274_s27 = sadd.s32 80, %s991_s21 }
  0x34   : >> { %s1015_s15 = sld [smem:[#allocation4 + %s265_s28]]  ;;  %s275_s0 = sadd.s32 %s870_s13, %s274_s27 }
  0x35   : >> { %p228_p4 = scmp.gt.s32.totalorder %s227_s30, 0  ;;  %p593_p5 = scmp.lt.s32.totalorder %s227_s30, 15 }
  0x36   : >> { %p237_p6 = scmp.gt.s32.totalorder %s236_s16, 0  ;;  %p598_p7 = scmp.lt.s32.totalorder %s236_s16, 15 }
  0x37   : >> { %s1142_s30 = smov (!%p228_p4, %s227_s30), 0  ;;  %p247_p9 = scmp.gt.s32.totalorder %s246_s18, 0 }
  0x38   : >> { %s1144_s16 = smov (!%p237_p6, %s236_s16), 0  ;;  %s1146_s30 = smov (!%p593_p5, %s1142_s30), 15 }
  0x39   : >> { %s1148_s16 = smov (!%p598_p7, %s1144_s16), 15  ;;  %s232_s12 = scalar_lea.vmem %s996_s9, %s1146_s30 }
  0x3a   : >> { %s241_s1 = scalar_lea.vmem %s996_s9, %s1148_s16  ;;  %p603_p10 = scmp.lt.s32.totalorder %s246_s18, 15  ;;  %v233_v0 = vld [vmem:[%s232_s12] sm:$0x1] }
  0x3b   : >> { %s1150_s18 = smov (!%p247_p9, %s246_s18), 0  ;;  %p257_p11 = scmp.gt.s32.totalorder %s256_s8, 0  ;;  %v242_v1 = vld [vmem:[%s241_s1] sm:$0x1] }
  0x3c   : >> { %p608_p12 = scmp.lt.s32.totalorder %s256_s8, 15  ;;  %s1152_s18 = smov (!%p603_p10, %s1150_s18), 15  ;;  %v243_v2 = vmax.f32 %v233_v0, %v242_v1 }
  0x3d   : >> { %s1154_s8 = smov (!%p257_p11, %s256_s8), 0  ;;  %s251_s27 = scalar_lea.vmem %s996_s9, %s1152_s18 }
  0x3e   : >> { %p267_p0 = scmp.gt.s32.totalorder %s1015_s15, 0  ;;  %s1156_s8 = smov (!%p608_p12, %s1154_s8), 15  ;;  %v252_v3 = vld [vmem:[%s251_s27] sm:$0x1] }
  0x3f   : >> { %s261_s7 = scalar_lea.vmem %s996_s9, %s1156_s8  ;;  %p613_p1 = scmp.lt.s32.totalorder %s1015_s15, 15  ;;  %v253_v4 = vmax.f32 %v243_v2, %v252_v3 }
  0x40   : >> { %s268_s28 = scalar_select %p267_p0, %s1015_s15, 0  ;;  %v262_v5 = vld [vmem:[%s261_s7] sm:$0x1] }
  0x41   : >> { %s276_s16 = sld [smem:[#allocation4 + %s275_s0]]  ;;  %s284_s14 = sadd.s32 96, %s991_s21  ;;  %v263_v6 = vmax.f32 %v253_v4, %v262_v5 }
  0x42   : >> { %s1158_s28 = smov (!%p613_p1, %s268_s28), 15  ;;  %s285_s19 = sadd.s32 %s870_s13, %s284_s14 }
  0x43   : >> { %s294_s20 = sadd.s32 112, %s991_s21  ;;  %s286_s22 = sld [smem:[#allocation4 + %s285_s19]] }
  0x44   : >> { %s271_s30 = scalar_lea.vmem %s996_s9, %s1158_s28  ;;  %s295_s18 = sadd.s32 %s870_s13, %s294_s20 }
  0x45   : >> { %s296_s6 = sld [smem:[#allocation4 + %s295_s18]]  ;;  %v272_v7 = vld [vmem:[%s271_s30] sm:$0x1]  ;;  %s304_s1 = scalar_lea.vmem [#allocation2], %s870_s13 }
  0x46   : >> { %v273_v8 = vmax.f32 %v263_v6, %v272_v7  ;;  %s225_s13 = sadd.s32 1, %s870_s13  }
  0x47   : >> { %p277_p2 = scmp.gt.s32.totalorder %s276_s16, 0  ;;  %p618_p3 = scmp.lt.s32.totalorder %s276_s16, 15 }
  0x48   : >> { %p222_p9 = scmp.ge.s32.totalorder %s225_s13, 8  }
  0x49   : >> { %s1160_s16 = smov (!%p277_p2, %s276_s16), 0  ;;  %p287_p4 = scmp.gt.s32.totalorder %s286_s22, 0  ;;  %v311_v15 = vld [vmem:[%s1102_s2] sm:$0xf] (%p222_p9)  ;;  %vm317_vm1 = vcmask (%p222_p9), 1043456   ;;  %v873_v17 = vmov (%p222_p9), 0.0  }
  0x4a   : >> { %p623_p5 = scmp.lt.s32.totalorder %s286_s22, 15  ;;  %s1162_s16 = smov (!%p618_p3, %s1160_s16), 15  ;;  %669 = vmatprep.subr.mxu1 (%p222_p9), %v873_v17  ;;  %664 = vmatprep.subr.mxu0 (%p222_p9), %v873_v17  ;;  %v312_v18 = vld [vmem:[%s1103_s3] sm:$0xf] (%p222_p9)  ;;  %vm313_vm2 = vcmask (%p222_p9), 31744   ;;  %vm874_vm3 = vmmov (%p222_p9), 0  }
  0x4b   : >> { %s1164_s22 = smov (!%p287_p4, %s286_s22), 0  ;;  %s281_s0 = scalar_lea.vmem %s996_s9, %s1162_s16  ;;  %670 = vmatpush3.msk.msra.mxu1 (%p222_p9), %vm317_vm1, %v311_v15  ;;  %671 = vmatprep.mubr.msk.f32.mxu1 (%p222_p9), %vm874_vm3, %v873_v17  ;;  %v637_v23 = vld [vmem:[%s1104_s4] ss:$0 sm:$0xff] (%p222_p9) }
  0x4c   : >> { %p297_p6 = scmp.gt.s32.totalorder %s296_s6, 0  ;;  %v282_v9 = vld [vmem:[%s281_s0] sm:$0x1]  ;;  %s1166_s22 = smov (!%p623_p5, %s1164_s22), 15  ;;  %665 = vmatpush3.msk.msra.mxu0 (%p222_p9), %vm317_vm1, %v312_v18  ;;  %666 = vmatprep.mubr.msk.f32.mxu0 (%p222_p9), %vm874_vm3, %v873_v17 }
  0x4d   : >> { %v283_v10 = vmax.f32 %v273_v8, %v282_v9  ;;  %s291_s15 = scalar_lea.vmem %s996_s9, %s1166_s22  ;;  %p628_p7 = scmp.lt.s32.totalorder %s296_s6, 15 }
  0x4e   : >> { %s298_s8 = scalar_select %p297_p6, %s296_s6, 0  ;;  %v292_v11 = vld [vmem:[%s291_s15] sm:$0x1] }
  0x4f   : >> { %v293_v12 = vmax.f32 %v283_v10, %v292_v11  ;;  %s1123_s7 = sshll.u32 (%p222_p9), %s850_s25, 3  ;;  %s639_s21 = sshll.u32 (%p222_p9), %s854_s26, 1 }
  0x50   : >> { %s1168_s8 = smov (!%p628_p7, %s298_s8), 15  ;;  %s307_s16 = scalar_lea.vmem (%p222_p9), %s996_s9, %s1123_s7 }
  0x51   : >> { %s301_s12 = scalar_lea.vmem %s996_s9, %s1168_s8  ;;  %224 = sbr.rel (!%p222_p9) target bundleno = 45 (0x2d), region = 88  ;;  %v308_v19 = vld [vmem:[%s307_s16] sm:$0xff] (%p222_p9) }
  0x52   : >> { %v302_v13 = vld [vmem:[%s301_s12] sm:$0x1]  ;;  %672 = vmatmul.mubr.msk.f32.vlgmr.msra.gmra.mxu1 (%p222_p9), %vm313_vm2, %v308_v19  ;;  %s489_s9 = sadd.s32 (%p222_p9), %s850_s25, %s639_s21  ;;  %s1124_s30 = scalar_lea.vmem (%p222_p9), [#allocation5], %s984_s17 }
  0x53   : >> { %v303_v14 = vmax.f32 %v293_v12, %v302_v13  ;;  %s640_s22 = sshll.u32 (%p222_p9), %s489_s9, 7  ;;  %s493_s18 = sshll.u32 (%p222_p9), %s1124_s30, 4  ;;  %s494_s18 = int_to_ptr.vmem [resolvable:$true] %s493_s18 }
  0x54   : > { %s491_s26 = scalar_lea.hbm (%p222_p9), %s1105_s5, %s640_s22  ;;  %s1125_s25 = smov (%p222_p9), %s1124_s30 }
  0x55   : >> { %306 = vst.msk [vmem:[%s304_s1] sm:$0x1] %vm305_vm0, %v303_v14  ;;  %s1126_s8 = sand.u32 (%p222_p9), 1, %s842_s24   ;;  %s768_s12 = scalar_lea.vmem (%p222_p9), %s494_s18, 128 }
  0x56   : > { %s478_s15 = scalar_lea.sflag [#allocation6], %s1126_s8  ;;  %p769_p10 = scmp.ne.s32.totalorder %s494_s18, %s768_s12 }
  0x57   : > { %s875_s1 = smov [#allocation5]  }
  0x58   : > { %p770_p11 = pnand %p769_p10, %p960_p8  ;;  %s772_s27 = sshll.u32 %s875_s1, 4  ;;  %s773_s27 = int_to_ptr.vmem [resolvable:$false] %s772_s27 }
  0x59   : > { %s774_s28 = scalar_lea.vmem %s773_s27, 256  ;;  %p775_p0 = scmp.lt.s32.totalorder %s494_s18, %s773_s27 }
  0x5a   : > { %p771_p12 = pneg %p770_p11  ;;  %p776_p1 = scmp.lt.s32.totalorder %s774_s28, %s768_s12 }
  0x5c   : > { %v309_v16 = vld [vmem:[#allocation2] sm:$0xff]  ;;  %p777_p2 = por %p776_p1, %p775_p0 }
  0x5d   : > { %v310_v20 = vsub.f32 %v309_v16, %v308_v19 }
  0x5e   : > { %p778_p3 = pnand %p777_p2, %p771_p12 }
  0x5f   : > { %667 = vmatmul.mubr.msk.f32.vlgmr.msra.gmra.mxu0 %vm313_vm2, %v310_v20 }
 0x112   : > { %v463_v21 = vpop.f32.mrf.mxu1 }
 0x114   : > { %v673_v25 = vpop.f32.mrf.mxu1 }
 0x11f   : > { %v387_v22 = vpop.f32.mrf.mxu0 }
 0x120   : > { %v464_v24 = vadd.f32 %v463_v21, %v387_v22 }
 0x121   : > { %v668_v26 = vpop.f32.mrf.mxu0 }
 0x122   : > { %v474_v27 = vadd.f32 %v637_v23, %v464_v24 }
 0x124   : > { %v475_v28 = vmax.f32 %v474_v27, 0.0 }
 0x126   : > { %476 = vst [vmem:[%s1125_s25] sm:$0xff] %v475_v28 }
 0x127   : > { %781 = shalt.err (!%p778_p3)
}
 0x128   : > { %s782_s7 = scalar_lea.hbm %s491_s26, 128  ;;  %s786_s14 = scalar_lea.hbm %s1105_s5, 512 }
 0x129   : > { %p783_p4 = scmp.ne.s32.totalorder %s491_s26, %s782_s7  ;;  %p787_p7 = scmp.lt.s32.totalorder %s491_s26, %s1105_s5 }
 0x12a   : > { %p788_p9 = scmp.lt.s32.totalorder %s786_s14, %s782_s7 }
 0x12b   : > { %p784_p5 = pnand %p783_p4, %p960_p8 }
 0x12c   : > { %p789_p10 = por %p788_p9, %p787_p7 }
 0x12d   : > { %p785_p6 = pneg %p784_p5 }
 0x12f   : > { %p790_p11 = pnand %p789_p10, %p785_p6 }
 0x131   : > { %793 = shalt.err (!%p790_p11)
}
 0x132   : > { %674 = dma.vmem_to_hbm [thread:$0]  (%p960_p8), %s494_s18, 128, %s491_s26, %s478_s15  }
 0x133 PF: > { %p680_p12 = scmp.ge.s32.totalorder %s866_s29, 2  ;;  %s505_s9 = sand.u32 1, %s838_s23  }
 0x134   : > { %s506_s13 = scalar_lea.sflag [#allocation6], %s505_s9 }
 0x135   : > { %p677_p0 = pnand %p680_p12, %p969_p13 }
 0x137   : > { %p678_p1 = pneg %p677_p0 }
 0x139   : > { %833 = dma.done.wait (%p678_p1), %s506_s13, 128  }
 0x13a   : > { %835 = vsyncadd (%p678_p1), %s506_s13, 4294967168  ;;  %s24_s29 = sadd.s32 1, %s866_s29   ;;  %s1127_s20 = sld [smem:[#allocation9_spill]] }
 0x13b   : > { %p21_p2 = scmp.ge.s32.totalorder %s24_s29, 6   ;;  %s1128_s0 = sld [smem:[#allocation14_spill]] }
 0x13c   : > { %s1129_s25 = sld [smem:[#allocation10_spill]]  ;;  %s1133_s23 = smov %s842_s24 }
 0x13d   : > { %s1130_s26 = sld [smem:[#allocation11_spill]]  ;;  %23 = sbr.rel (!%p21_p2) target bundleno = 20 (0x14), region = 99 }
 0x13e   : > { %s1131_s27 = sld [smem:[#allocation12_spill]] }
 0x13f   : > { %s1132_s28 = sld [smem:[#allocation13_spill]] }
 0x140   : > { %s1134_s24 = smov %s1127_s20 }
 0x142   :  { %511 = vsyncpa [#allocation6], 1 }
 0x143   :  { %513 = vsyncpa [#allocation6 + $0x1], 1 }

// kernel: tpu_custom_call.1
= control target key start
LH: loop header
LB: loop body
LE: loop exit
PB: predicated region body
PF: predicated region fallthrough
CT: control target
= control target key end

     0   :  { %s1098_s0 = inlined_call_operand.vmem [shape: s32[256], index: 0, kind: input, shape index: {}]   ;;  %s1099_s1 = inlined_call_operand.vmem [shape: f32[2,16,4], index: 1, kind: input, shape index: {}]   ;;  %s1100_s2 = inlined_call_operand.vmem [shape: f32[4,128], index: 2, kind: input, shape index: {}]   ;;  %s1101_s3 = inlined_call_operand.vmem [shape: f32[4,128], index: 3, kind: input, shape index: {}]   ;;  %s1102_s4 = inlined_call_operand.vmem [shape: f32[1,128], index: 4, kind: input, shape index: {}]   ;;  %s1103_s5 = inlined_call_operand.hbm [shape: f32[2,16,128], index: 5, kind: output, shape index: {}]  }
   0x1   :  { %1111 = sst [smem:[#allocation15_spill]] %s1099_s1  ;;  %s10_s20 = sshll.u32 %s1098_s0, 4  ;;  %s11_s20 = int_to_ptr.vmem [resolvable:$true] %s10_s20 }
   0x2   :  { %s754_s21 = scalar_lea.vmem %s11_s20, 32  ;;  %p759_p1 = scmp.lt.s32.totalorder %s11_s20, %s11_s20 }
   0x3   :  { %p755_p0 = scmp.ne.s32.totalorder %s11_s20, %s754_s21  ;;  %p760_p2 = scmp.lt.s32.totalorder %s754_s21, %s754_s21 }
   0x5   :  { %p761_p3 = por %p760_p2, %p759_p1 }
   0x7   :  { %p762_p4 = pnand %p761_p3, %p755_p0 }
   0x9   :  { %765 = shalt.err (!%p762_p4)  }
   0xa   :  { %s870_s22 = smov [#allocation4]  }
   0xb   :  { %13 = dma.vmem_to_smem %s11_s20, 32, %s870_s22, [#allocation3] }
   0xc   :  { %828 = dma.done.wait [#allocation3], 32 }
   0xd   :  { %829 = vsyncadd [#allocation3], 4294967264 }
   0xe   :  { %15 = sfence }
   0xf   :  { %16 = vsyncpa [#allocation6], 0 }
  0x10   :  { %18 = vsyncpa [#allocation6 + $0x1], 0  ;;  %s907_s23 = smov 0   ;;  %s909_s24 = smov 0  }
  0x11   :  { %s911_s0 = smov 0   ;;  %s913_s25 = smov 0  }
  0x12   :  { %s915_s26 = smov 0   ;;  %s917_s27 = smov 0  }
  0x13   :  { %s919_s28 = smov 0   ;;  %s921_s29 = smov 0  }
  0x14 LB: > { %1112 = sst [smem:[#allocation9_spill]] %s844_s0  ;;  %s581_s30 = sadd.s32 4294967295, %s864_s29   ;;  %s864_s29 = sphi %s921_s29, %s24_s29   ;;  %s860_s28 = sphi %s919_s28, %s1130_s28   ;;  %s856_s27 = sphi %s917_s27, %s1129_s27   ;;  %s852_s26 = sphi %s915_s26, %s1128_s26   ;;  %s848_s25 = sphi %s913_s25, %s1127_s25   ;;  %s844_s0 = sphi %s911_s0, %s1126_s0   ;;  %s840_s24 = sphi %s909_s24, %s1132_s24   ;;  %s836_s23 = sphi %s907_s23, %s1131_s23  }
  0x15   : > { %1113 = sst [smem:[#allocation10_spill]] %s856_s27  ;;  %s582_s6 = sadd.s32 4294967294, %s864_s29  }
  0x16   : > { %1114 = sst [smem:[#allocation11_spill]] %s860_s28  ;;  %s33_s7 = sadd.s32 1, %s856_s27 }
  0x17   : > { %p34_p5 = scmp.ge.s32.totalorder %s33_s7, 2  ;;  %s36_s8 = sadd.s32 1, %s860_s28 }
  0x18   : > { %p144_p6 = scmp.ne.s32.totalorder %s844_s0, %s840_s24  ;;  %p145_p7 = scmp.eq.s32.totalorder %s581_s30, 3 }
  0x19   : > { %s1134_s7 = smov (%p34_p5, %s33_s7), 0  ;;  %s1136_s8 = smov (!%p34_p5, %s36_s8), %s860_s28 }
  0x1a   : > { %1115 = sst [smem:[#allocation12_spill]] %s1134_s7  ;;  %s130_s9 = ssub.s32 %s856_s27, %s1134_s7 }
  0x1b   : > { %p958_p8 = por %p145_p7, %p144_p6  ;;  %p38_p9 = scmp.ge.s32.totalorder %s1136_s8, 2 }
  0x1c   : > { %p150_p10 = scmp.ne.s32.totalorder %s840_s24, %s836_s23  ;;  %p151_p11 = scmp.eq.s32.totalorder %s582_s6, 3 }
  0x1d   : > { %p585_p12 = scmp.ge.s32.totalorder %s864_s29, 1  ;;  %s1138_s8 = smov (%p38_p9, %s1136_s8), 0 }
  0x1e   : > { %1117 = sst [smem:[#allocation13_spill]] %s1138_s8  ;;  %p967_p13 = por %p151_p11, %p150_p10 }
  0x1f   : > { %p186_p0 = scmp.lt.s32.totalorder %s864_s29, 5  ;;  %s129_s12 = ssub.s32 %s860_s28, %s1138_s8 }
  0x20   : > { %s134_s13 = sadd.s32 1, %s844_s0  ;;  %s131_s14 = sor.u32 %s130_s9, %s129_s12 }
  0x21   : > { %p187_p1 = pnand %p585_p12, %p186_p0  ;;  %p132_p2 = scmp.eq.s32.totalorder %s131_s14, 0 }
  0x22   : > { %s1104_s16 = sand.u32 (!%p187_p1), 1, %s840_s24   ;;  %p212_p3 = scmp.lt.s32.totalorder (!%p187_p1), %s852_s26, 1 }
  0x23   : > { %s976_s15 = scalar_select %p132_p2, %s844_s0, %s134_s13  }
  0x24   : > { %190 = sbr.rel (%p187_p1) target bundleno = 307 (0x133), region = 36  ;;  %s982_s17 = sshll.u32 (!%p187_p1), %s1104_s16, 3 }
  0x25   : > { %1119 = sst [smem:[#allocation14_spill]] %s976_s15  ;;  %s1105_s18 = sshll.u32 (!%p187_p1), %s848_s25, 3 }
  0x26   : > { %s590_s19 = sshll.u32 (!%p187_p1), %s852_s26, 7  ;;  %s1120_s1 = sld [smem:[#allocation15_spill]] (!%p187_p1) }
  0x27   : > { %s989_s21 = sadd.s32 (!%p187_p1), %s590_s19, %s1105_s18  ;;  %s997_s13 = smov (!%p187_p1), 0  }
  0x29   : > { %s213_s20 = scalar_select %p212_p3, %s852_s26, 1 }
  0x2b   : > { %s641_s22 = sshll.u32 %s213_s20, 4 }
  0x2c   : > { %s994_s9 = scalar_lea.vmem %s1120_s1, %s641_s22 }
  0x2d LB: >> { %s234_s14 = sadd.s32 16, %s989_s21  ;;  %s244_s19 = sadd.s32 32, %s989_s21  ;;  %vm305_vm0 = vcmask 24576   ;;  %s868_s13 = sphi %s997_s13, %s225_s13  }
  0x2e   : >> { %s226_s20 = sadd.s32 %s868_s13, %s989_s21  ;;  %s235_s22 = sadd.s32 %s868_s13, %s234_s14 }
  0x2f   : >> { %s227_s30 = sld [smem:[#allocation4 + %s226_s20]]  ;;  %s245_s6 = sadd.s32 %s868_s13, %s244_s19 }
  0x30   : >> { %s236_s16 = sld [smem:[#allocation4 + %s235_s22]]  ;;  %s254_s12 = sadd.s32 48, %s989_s21 }
  0x31   : >> { %s246_s18 = sld [smem:[#allocation4 + %s245_s6]]  ;;  %s255_s1 = sadd.s32 %s868_s13, %s254_s12 }
  0x32   : >> { %s256_s8 = sld [smem:[#allocation4 + %s255_s1]]  ;;  %s264_s7 = sadd.s32 64, %s989_s21 }
  0x33   : >> { %s265_s28 = sadd.s32 %s868_s13, %s264_s7  ;;  %s274_s27 = sadd.s32 80, %s989_s21 }
  0x34   : >> { %s1013_s15 = sld [smem:[#allocation4 + %s265_s28]]  ;;  %s275_s0 = sadd.s32 %s868_s13, %s274_s27 }
  0x35   : >> { %p228_p4 = scmp.gt.s32.totalorder %s227_s30, 0  ;;  %p591_p5 = scmp.lt.s32.totalorder %s227_s30, 15 }
  0x36   : >> { %p237_p6 = scmp.gt.s32.totalorder %s236_s16, 0  ;;  %p596_p7 = scmp.lt.s32.totalorder %s236_s16, 15 }
  0x37   : >> { %s1140_s30 = smov (!%p228_p4, %s227_s30), 0  ;;  %p247_p9 = scmp.gt.s32.totalorder %s246_s18, 0 }
  0x38   : >> { %s1142_s16 = smov (!%p237_p6, %s236_s16), 0  ;;  %s1144_s30 = smov (!%p591_p5, %s1140_s30), 15 }
  0x39   : >> { %s1146_s16 = smov (!%p596_p7, %s1142_s16), 15  ;;  %s232_s12 = scalar_lea.vmem %s994_s9, %s1144_s30 }
  0x3a   : >> { %s241_s1 = scalar_lea.vmem %s994_s9, %s1146_s16  ;;  %p601_p10 = scmp.lt.s32.totalorder %s246_s18, 15  ;;  %v233_v0 = vld [vmem:[%s232_s12] sm:$0x1] }
  0x3b   : >> { %s1148_s18 = smov (!%p247_p9, %s246_s18), 0  ;;  %p257_p11 = scmp.gt.s32.totalorder %s256_s8, 0  ;;  %v242_v1 = vld [vmem:[%s241_s1] sm:$0x1] }
  0x3c   : >> { %p606_p12 = scmp.lt.s32.totalorder %s256_s8, 15  ;;  %s1150_s18 = smov (!%p601_p10, %s1148_s18), 15  ;;  %v243_v2 = vmax.f32 %v233_v0, %v242_v1 }
  0x3d   : >> { %s1152_s8 = smov (!%p257_p11, %s256_s8), 0  ;;  %s251_s27 = scalar_lea.vmem %s994_s9, %s1150_s18 }
  0x3e   : >> { %p267_p0 = scmp.gt.s32.totalorder %s1013_s15, 0  ;;  %s1154_s8 = smov (!%p606_p12, %s1152_s8), 15  ;;  %v252_v3 = vld [vmem:[%s251_s27] sm:$0x1] }
  0x3f   : >> { %s261_s7 = scalar_lea.vmem %s994_s9, %s1154_s8  ;;  %p611_p1 = scmp.lt.s32.totalorder %s1013_s15, 15  ;;  %v253_v4 = vmax.f32 %v243_v2, %v252_v3 }
  0x40   : >> { %s268_s28 = scalar_select %p267_p0, %s1013_s15, 0  ;;  %v262_v5 = vld [vmem:[%s261_s7] sm:$0x1] }
  0x41   : >> { %s276_s16 = sld [smem:[#allocation4 + %s275_s0]]  ;;  %s284_s14 = sadd.s32 96, %s989_s21  ;;  %v263_v6 = vmax.f32 %v253_v4, %v262_v5 }
  0x42   : >> { %s1156_s28 = smov (!%p611_p1, %s268_s28), 15  ;;  %s285_s19 = sadd.s32 %s868_s13, %s284_s14 }
  0x43   : >> { %s294_s20 = sadd.s32 112, %s989_s21  ;;  %s286_s22 = sld [smem:[#allocation4 + %s285_s19]] }
  0x44   : >> { %s271_s30 = scalar_lea.vmem %s994_s9, %s1156_s28  ;;  %s295_s18 = sadd.s32 %s868_s13, %s294_s20 }
  0x45   : >> { %s296_s6 = sld [smem:[#allocation4 + %s295_s18]]  ;;  %v272_v7 = vld [vmem:[%s271_s30] sm:$0x1]  ;;  %s304_s1 = scalar_lea.vmem [#allocation2], %s868_s13 }
  0x46   : >> { %v273_v8 = vmax.f32 %v263_v6, %v272_v7  ;;  %s225_s13 = sadd.s32 1, %s868_s13  }
  0x47   : >> { %p277_p2 = scmp.gt.s32.totalorder %s276_s16, 0  ;;  %p616_p3 = scmp.lt.s32.totalorder %s276_s16, 15 }
  0x48   : >> { %p222_p9 = scmp.ge.s32.totalorder %s225_s13, 8  }
  0x49   : >> { %s1158_s16 = smov (!%p277_p2, %s276_s16), 0  ;;  %p287_p4 = scmp.gt.s32.totalorder %s286_s22, 0  ;;  %v311_v15 = vld [vmem:[%s1100_s2] sm:$0xf] (%p222_p9)  ;;  %vm317_vm1 = vcmask (%p222_p9), 1043456   ;;  %v871_v17 = vmov (%p222_p9), 0.0  }
  0x4a   : >> { %p621_p5 = scmp.lt.s32.totalorder %s286_s22, 15  ;;  %s1160_s16 = smov (!%p616_p3, %s1158_s16), 15  ;;  %667 = vmatprep.subr.mxu1 (%p222_p9), %v871_v17  ;;  %662 = vmatprep.subr.mxu0 (%p222_p9), %v871_v17  ;;  %v312_v18 = vld [vmem:[%s1101_s3] sm:$0xf] (%p222_p9)  ;;  %vm313_vm2 = vcmask (%p222_p9), 31744   ;;  %vm872_vm3 = vmmov (%p222_p9), 0  }
  0x4b   : >> { %s1162_s22 = smov (!%p287_p4, %s286_s22), 0  ;;  %s281_s0 = scalar_lea.vmem %s994_s9, %s1160_s16  ;;  %668 = vmatpush3.msk.msra.mxu1 (%p222_p9), %vm317_vm1, %v311_v15  ;;  %669 = vmatprep.mubr.msk.f32.mxu1 (%p222_p9), %vm872_vm3, %v871_v17  ;;  %v635_v23 = vld [vmem:[%s1102_s4] ss:$0 sm:$0xff] (%p222_p9) }
  0x4c   : >> { %p297_p6 = scmp.gt.s32.totalorder %s296_s6, 0  ;;  %v282_v9 = vld [vmem:[%s281_s0] sm:$0x1]  ;;  %s1164_s22 = smov (!%p621_p5, %s1162_s22), 15  ;;  %663 = vmatpush3.msk.msra.mxu0 (%p222_p9), %vm317_vm1, %v312_v18  ;;  %664 = vmatprep.mubr.msk.f32.mxu0 (%p222_p9), %vm872_vm3, %v871_v17 }
  0x4d   : >> { %v283_v10 = vmax.f32 %v273_v8, %v282_v9  ;;  %s291_s15 = scalar_lea.vmem %s994_s9, %s1164_s22  ;;  %p626_p7 = scmp.lt.s32.totalorder %s296_s6, 15 }
  0x4e   : >> { %s298_s8 = scalar_select %p297_p6, %s296_s6, 0  ;;  %v292_v11 = vld [vmem:[%s291_s15] sm:$0x1] }
  0x4f   : >> { %v293_v12 = vmax.f32 %v283_v10, %v292_v11  ;;  %s1121_s7 = sshll.u32 (%p222_p9), %s848_s25, 3  ;;  %s637_s21 = sshll.u32 (%p222_p9), %s852_s26, 1 }
  0x50   : >> { %s1166_s8 = smov (!%p626_p7, %s298_s8), 15  ;;  %s307_s16 = scalar_lea.vmem (%p222_p9), %s994_s9, %s1121_s7 }
  0x51   : >> { %s301_s12 = scalar_lea.vmem %s994_s9, %s1166_s8  ;;  %224 = sbr.rel (!%p222_p9) target bundleno = 45 (0x2d), region = 88  ;;  %v308_v19 = vld [vmem:[%s307_s16] sm:$0xff] (%p222_p9) }
  0x52   : >> { %v302_v13 = vld [vmem:[%s301_s12] sm:$0x1]  ;;  %670 = vmatmul.mubr.msk.f32.vlgmr.msra.gmra.mxu1 (%p222_p9), %vm313_vm2, %v308_v19  ;;  %s489_s9 = sadd.s32 (%p222_p9), %s848_s25, %s637_s21  ;;  %s1122_s30 = scalar_lea.vmem (%p222_p9), [#allocation5], %s982_s17 }
  0x53   : >> { %v303_v14 = vmax.f32 %v293_v12, %v302_v13  ;;  %s638_s22 = sshll.u32 (%p222_p9), %s489_s9, 7  ;;  %s493_s18 = sshll.u32 (%p222_p9), %s1122_s30, 4  ;;  %s494_s18 = int_to_ptr.vmem [resolvable:$true] %s493_s18 }
  0x54   : > { %s491_s26 = scalar_lea.hbm (%p222_p9), %s1103_s5, %s638_s22  ;;  %s1123_s25 = smov (%p222_p9), %s1122_s30 }
  0x55   : >> { %306 = vst.msk [vmem:[%s304_s1] sm:$0x1] %vm305_vm0, %v303_v14  ;;  %s1124_s8 = sand.u32 (%p222_p9), 1, %s840_s24   ;;  %s766_s12 = scalar_lea.vmem (%p222_p9), %s494_s18, 128 }
  0x56   : > { %s478_s15 = scalar_lea.sflag [#allocation6], %s1124_s8  ;;  %p767_p10 = scmp.ne.s32.totalorder %s494_s18, %s766_s12 }
  0x57   : > { %s873_s1 = smov [#allocation5]  }
  0x58   : > { %p768_p11 = pnand %p767_p10, %p958_p8  ;;  %s770_s27 = sshll.u32 %s873_s1, 4  ;;  %s771_s27 = int_to_ptr.vmem [resolvable:$false] %s770_s27 }
  0x59   : > { %s772_s28 = scalar_lea.vmem %s771_s27, 256  ;;  %p773_p0 = scmp.lt.s32.totalorder %s494_s18, %s771_s27 }
  0x5a   : > { %p769_p12 = pneg %p768_p11  ;;  %p774_p1 = scmp.lt.s32.totalorder %s772_s28, %s766_s12 }
  0x5c   : > { %v309_v16 = vld [vmem:[#allocation2] sm:$0xff]  ;;  %p775_p2 = por %p774_p1, %p773_p0 }
  0x5d   : > { %v310_v20 = vsub.f32 %v309_v16, %v308_v19 }
  0x5e   : > { %p776_p3 = pnand %p775_p2, %p769_p12 }
  0x5f   : > { %665 = vmatmul.mubr.msk.f32.vlgmr.msra.gmra.mxu0 %vm313_vm2, %v310_v20 }
 0x112   : > { %v463_v21 = vpop.f32.mrf.mxu1 }
 0x114   : > { %v671_v25 = vpop.f32.mrf.mxu1 }
 0x11f   : > { %v387_v22 = vpop.f32.mrf.mxu0 }
 0x120   : > { %v464_v24 = vadd.f32 %v463_v21, %v387_v22 }
 0x121   : > { %v666_v26 = vpop.f32.mrf.mxu0 }
 0x122   : > { %v474_v27 = vadd.f32 %v635_v23, %v464_v24 }
 0x124   : > { %v475_v28 = vmax.f32 %v474_v27, 0.0 }
 0x126   : > { %476 = vst [vmem:[%s1123_s25] sm:$0xff] %v475_v28 }
 0x127   : > { %779 = shalt.err (!%p776_p3)
}
 0x128   : > { %s780_s7 = scalar_lea.hbm %s491_s26, 128  ;;  %s784_s14 = scalar_lea.hbm %s1103_s5, 512 }
 0x129   : > { %p781_p4 = scmp.ne.s32.totalorder %s491_s26, %s780_s7  ;;  %p785_p7 = scmp.lt.s32.totalorder %s491_s26, %s1103_s5 }
 0x12a   : > { %p786_p9 = scmp.lt.s32.totalorder %s784_s14, %s780_s7 }
 0x12b   : > { %p782_p5 = pnand %p781_p4, %p958_p8 }
 0x12c   : > { %p787_p10 = por %p786_p9, %p785_p7 }
 0x12d   : > { %p783_p6 = pneg %p782_p5 }
 0x12f   : > { %p788_p11 = pnand %p787_p10, %p783_p6 }
 0x131   : > { %791 = shalt.err (!%p788_p11)
}
 0x132   : > { %672 = dma.vmem_to_hbm [thread:$0]  (%p958_p8), %s494_s18, 128, %s491_s26, %s478_s15  }
 0x133 PF: > { %p678_p12 = scmp.ge.s32.totalorder %s864_s29, 2  ;;  %s505_s9 = sand.u32 1, %s836_s23  }
 0x134   : > { %s506_s13 = scalar_lea.sflag [#allocation6], %s505_s9 }
 0x135   : > { %p675_p0 = pnand %p678_p12, %p967_p13 }
 0x137   : > { %p676_p1 = pneg %p675_p0 }
 0x139   : > { %831 = dma.done.wait (%p676_p1), %s506_s13, 128  }
 0x13a   : > { %833 = vsyncadd (%p676_p1), %s506_s13, 4294967168  ;;  %s24_s29 = sadd.s32 1, %s864_s29   ;;  %s1125_s20 = sld [smem:[#allocation9_spill]] }
 0x13b   : > { %p21_p2 = scmp.ge.s32.totalorder %s24_s29, 6   ;;  %s1126_s0 = sld [smem:[#allocation14_spill]] }
 0x13c   : > { %s1127_s25 = sld [smem:[#allocation10_spill]]  ;;  %s1131_s23 = smov %s840_s24 }
 0x13d   : > { %s1128_s26 = sld [smem:[#allocation11_spill]]  ;;  %23 = sbr.rel (!%p21_p2) target bundleno = 20 (0x14), region = 99 }
 0x13e   : > { %s1129_s27 = sld [smem:[#allocation12_spill]] }
 0x13f   : > { %s1130_s28 = sld [smem:[#allocation13_spill]] }
 0x140   : > { %s1132_s24 = smov %s1125_s20 }
 0x142   :  { %511 = vsyncpa [#allocation6], 1 }
 0x143   :  { %513 = vsyncpa [#allocation6 + $0x1], 1 }

</bundles_post_ra>
